<compile_context>
chip_gen: v7x
topology: tpu7x:2x2x1
jax: 0.10.0
libtpu: 0.0.40
codegen_flags: <defaults>
</compile_context>

<pallas_src>
import functools

import jax
import jax.numpy as jnp
from jax.experimental import pallas as pl
from jax.experimental.pallas import tpu as pltpu

EPS = 1e-5  # PyTorch nn.LayerNorm default


def _round_up(x, m):
    return ((x + m - 1) // m) * m


def _vmem_capacity_bytes():
    try:
        cap = getattr(pltpu.get_tpu_info(), "vmem_capacity_bytes", None)
        if cap:
            return int(cap)
    except Exception:
        pass
    return 64 * 1024 * 1024  # conservative (v7x-sized) fallback


def _ln_linear_kernel(x_ref, gamma_ref, beta_ref, w_ref, b_ref, o_ref, *,
                      d_real, needs_mask):
    """Fused LayerNorm (over the real feature dim) + Linear on one tile.

    x_ref:     (TR, Dp)  activation row tile
    gamma_ref: (1, Dp)   LayerNorm weight (f32, zero padded past d_real)
    beta_ref:  (1, Dp)   LayerNorm bias   (f32, zero padded)
    w_ref:     (Dp, TN)  Linear weight strip, x @ W layout (MXU dtype)
    b_ref:     (1, TN)   Linear bias strip (f32)
    o_ref:     (TR, TN)  output tile
    """
    x = x_ref[...].astype(jnp.float32)
    dp = x.shape[-1]
    inv_d = 1.0 / d_real

    if needs_mask:
        lane = jax.lax.broadcasted_iota(jnp.int32, (1, dp), 1)
        valid = lane < d_real
        x = jnp.where(valid, x, 0.0)

    # Two-pass statistics over the real feature dim (padded lanes masked to 0).
    mean = jnp.sum(x, axis=-1, keepdims=True) * inv_d
    centered = x - mean
    if needs_mask:
        centered = jnp.where(valid, centered, 0.0)
    var = jnp.sum(centered * centered, axis=-1, keepdims=True) * inv_d
    inv_std = jax.lax.rsqrt(var + EPS)

    normed = centered * inv_std * gamma_ref[...] + beta_ref[...]

    # fn = Linear(dim, dim): MXU in the weight dtype, f32 accumulation.
    y = jnp.dot(normed.astype(w_ref.dtype), w_ref[...],
                preferred_element_type=jnp.float32)
    y = y + b_ref[...]
    o_ref[...] = y.astype(o_ref.dtype)


def layer_normalize_fn(x, gamma, beta, w, b, *, mxu_dtype=jnp.bfloat16,
                       block_rows=None):
    """x: (B, S, D). Returns fn(LayerNorm(x)) with fn = Linear(D, D) (x @ W + b)."""
    B, S, D = x.shape
    R = B * S
    x_itemsize = jnp.dtype(x.dtype).itemsize
    w_itemsize = jnp.dtype(mxu_dtype).itemsize

    vmem_cap = _vmem_capacity_bytes()

    # Lane-dense feature dim.  When D is already a multiple of 128 the
    # activation is used in place (no padded HBM copy of x, no output slice).
    Dp = max(128, _round_up(D, 128))
    needs_pad = (Dp != D)

    x2 = x.reshape(R, D)
    gamma2 = gamma.astype(jnp.float32).reshape(1, D)
    beta2 = beta.astype(jnp.float32).reshape(1, D)
    b2 = b.astype(jnp.float32).reshape(1, D)
    w2 = w.astype(mxu_dtype)
    if needs_pad:
        pad = Dp - D
        x2 = jnp.pad(x2, ((0, 0), (0, pad)))
        gamma2 = jnp.pad(gamma2, ((0, 0), (0, pad)))
        beta2 = jnp.pad(beta2, ((0, 0), (0, pad)))
        b2 = jnp.pad(b2, ((0, 0), (0, pad)))
        w2 = jnp.pad(w2, ((0, pad), (0, pad)))

    # Output-column tiling: keep the whole weight VMEM-resident when it fits,
    # otherwise stream it as (Dp, TN) strips via index_map (0, j).
    weight_budget = min(8 * 1024 * 1024, vmem_cap // 8)
    TN = Dp
    if Dp * Dp * w_itemsize > weight_budget:
        TN = 128
        for cand in range(Dp - 128, 127, -128):
            if Dp % cand == 0 and Dp * cand * w_itemsize <= weight_budget:
                TN = cand
                break
    n_col = Dp // TN
    w_bufs = 1 if n_col == 1 else 2

    # Row tile: multiple of 8, sized from device VMEM.  Budget includes the
    # double-buffered x/out tiles AND the f32 intermediates materialized in
    # the kernel (x_f32, centered, normed, MXU operand, f32 matmul result).
    per_row = (2 * Dp * x_itemsize        # x tile, double-buffered
               + 2 * TN * x_itemsize      # out tile, double-buffered
               + 4 * Dp * 4               # f32 intermediates
               + TN * 4)                  # f32 matmul accumulator
    w_bytes = w_bufs * Dp * TN * w_itemsize
    if block_rows is None:
        tile_budget = max(int(0.40 * vmem_cap) - w_bytes, 1 * 1024 * 1024)
        tr = max(8, min(1024, (tile_budget // per_row) // 8 * 8))
    else:
        tr = _round_up(max(block_rows, 8), 8)
    if R > 8:  # keep >= 2 grid steps so both v7x TensorCores get work
        tr = min(tr, _round_up(-(-R // 2), 8))
    TR = min(tr, _round_up(R, 8))
    n_row = pl.cdiv(R, TR)

    needed = TR * per_row + w_bytes + 2 * (2 * Dp + TN) * 4
    vmem_limit = int(min(max(int(1.5 * needed), 8 * 1024 * 1024),
                         int(0.9 * vmem_cap)))

    kernel = functools.partial(_ln_linear_kernel, d_real=D, needs_mask=needs_pad)

    resident = dict(pipeline_mode=pl.Buffered(1))   # grid-invariant operands
    w_kwargs = resident if n_col == 1 else {}

    out = pl.pallas_call(
        kernel,
        out_shape=jax.ShapeDtypeStruct((R, Dp), x.dtype),
        grid_spec=pl.GridSpec(
            grid=(n_row, n_col),
            in_specs=[
                pl.BlockSpec((TR, Dp), lambda i, j: (i, 0)),                # x
                pl.BlockSpec((1, Dp), lambda i, j: (0, 0), **resident),     # gamma
                pl.BlockSpec((1, Dp), lambda i, j: (0, 0), **resident),     # beta
                pl.BlockSpec((Dp, TN), lambda i, j: (0, j), **w_kwargs),    # W
                pl.BlockSpec((1, TN), lambda i, j: (0, j), **w_kwargs),     # b
            ],
            out_specs=pl.BlockSpec((TR, TN), lambda i, j: (i, j)),
        ),
        compiler_params=pltpu.CompilerParams(
            dimension_semantics=("parallel", "arbitrary"),
            vmem_limit_bytes=vmem_limit,
        ),
        cost_estimate=pl.CostEstimate(
            flops=2 * R * Dp * Dp + 10 * R * Dp,
            transcendentals=R,
            bytes_accessed=2 * R * Dp * x_itemsize + Dp * Dp * w_itemsize,
        ),
    )(x2, gamma2, beta2, w2, b2)

    if needs_pad:
        out = out[:, :D]
    return out.reshape(B, S, D)


def _reference(x, gamma, beta, w, b):
    xf = x.astype(jnp.float32)
    mean = jnp.mean(xf, axis=-1, keepdims=True)
    var = jnp.mean((xf - mean) ** 2, axis=-1, keepdims=True)
    normed = (xf - mean) / jnp.sqrt(var + EPS) * gamma + beta
    return jnp.einsum("bsd,de->bse", normed, w,
                      precision=jax.lax.Precision.HIGHEST) + b


if __name__ == "__main__":
    key = jax.random.PRNGKey(0)
    k_x, k_w, k_b = jax.random.split(key, 3)

    B, S, D = 2, 8, 32
    x = jax.random.normal(k_x, (B, S, D), dtype=jnp.float32)

    # LayerNorm params (PyTorch default init: weight=1, bias=0)
    gamma = jnp.ones((D,), dtype=jnp.float32)
    beta = jnp.zeros((D,), dtype=jnp.float32)

    # fn = Linear(D, D), deterministic init; stored as (D_in, D_out) for x @ W
    w = jax.random.normal(k_w, (D, D), dtype=jnp.float32) * (1.0 / jnp.sqrt(D))
    b = jax.random.normal(k_b, (D,), dtype=jnp.float32) * 0.01

    ref = _reference(x, gamma, beta, w, b)

    # f32 MXU path: tight-tolerance correctness check.
    out_f32 = layer_normalize_fn(x, gamma, beta, w, b, mxu_dtype=jnp.float32)
    jax.block_until_ready(out_f32)
    assert out_f32.shape == (B, S, D)
    assert jnp.allclose(out_f32, ref, atol=1e-4, rtol=1e-4), "f32 path mismatch"

    # Default bf16 MXU path (fast path): bf16-level tolerance.
    out_bf16 = layer_normalize_fn(x, gamma, beta, w, b)
    jax.block_until_ready(out_bf16)
    assert out_bf16.shape == (B, S, D)
    assert jnp.allclose(out_bf16, ref, atol=3e-2, rtol=3e-2), "bf16 path mismatch"

    print("KERNEL_OK")
</pallas_src>

<mosaic_0001>
module attributes {stable_mosaic.version = 11 : i64} {
  func.func @_ln_linear_kernel(%arg0: i32, %arg1: i32, %arg2: memref<8x128xf32, #tpu.memory_space<vmem>>, %arg3: memref<1x128xf32, #tpu.memory_space<vmem>>, %arg4: memref<1x128xf32, #tpu.memory_space<vmem>>, %arg5: memref<128x128xf32, #tpu.memory_space<vmem>>, %arg6: memref<1x128xf32, #tpu.memory_space<vmem>>, %arg7: memref<8x128xf32, #tpu.memory_space<vmem>>) attributes {dimension_semantics = [#tpu.dimension_semantics<parallel>, #tpu.dimension_semantics<arbitrary>], iteration_bounds = array<i64: 2, 1>, scalar_prefetch = 0 : i64, scratch_operands = 0 : i64, tpu.core_type = #tpu.core_type<tc>, window_params = [{transform_indices = @transform_0, window_bounds = array<i64: 8, 128>}, {pipeline_mode = #tpu.pipeline_mode<synchronous>, transform_indices = @transform_1, window_bounds = array<i64: 1, 128>}, {pipeline_mode = #tpu.pipeline_mode<synchronous>, transform_indices = @transform_2, window_bounds = array<i64: 1, 128>}, {pipeline_mode = #tpu.pipeline_mode<synchronous>, transform_indices = @transform_3, window_bounds = array<i64: 128, 128>}, {pipeline_mode = #tpu.pipeline_mode<synchronous>, transform_indices = @transform_4, window_bounds = array<i64: 1, 128>}, {transform_indices = @transform_5, window_bounds = array<i64: 8, 128>}]} {
    %c0 = arith.constant 0 : index
    %c0_0 = arith.constant 0 : index
    %0 = vector.load %arg2[%c0, %c0_0] : memref<8x128xf32, #tpu.memory_space<vmem>>, vector<8x128xf32>
    %1 = tpu.iota {dimensions = array<i32: 1>} : vector<1x128xi32>
    %c32_i32 = arith.constant 32 : i32
    %2 = vector.broadcast %c32_i32 : i32 to vector<1x128xi32>
    %3 = arith.cmpi slt, %1, %2 : vector<1x128xi32>
    %cst = arith.constant 0.000000e+00 : f32
    %4 = vector.shape_cast %3 : vector<1x128xi1> to vector<1x128xi1>
    %5 = vector.broadcast %4 : vector<1x128xi1> to vector<8x128xi1>
    %6 = vector.broadcast %cst : f32 to vector<8x128xf32>
    %7 = arith.select %5, %0, %6 : vector<8x128xi1>, vector<8x128xf32>
    %cst_1 = arith.constant dense<0.000000e+00> : vector<8xf32>
    %8 = vector.multi_reduction <add>, %7, %cst_1 [1] : vector<8x128xf32> to vector<8xf32>
    %9 = vector.shape_cast %8 : vector<8xf32> to vector<8x1xf32>
    %cst_2 = arith.constant 3.125000e-02 : f32
    %10 = vector.broadcast %cst_2 : f32 to vector<8x1xf32>
    %11 = arith.mulf %9, %10 : vector<8x1xf32>
    %12 = vector.broadcast %11 : vector<8x1xf32> to vector<8x128xf32>
    %13 = arith.subf %7, %12 : vector<8x128xf32>
    %cst_3 = arith.constant 0.000000e+00 : f32
    %14 = vector.shape_cast %3 : vector<1x128xi1> to vector<1x128xi1>
    %15 = vector.broadcast %14 : vector<1x128xi1> to vector<8x128xi1>
    %16 = vector.broadcast %cst_3 : f32 to vector<8x128xf32>
    %17 = arith.select %15, %13, %16 : vector<8x128xi1>, vector<8x128xf32>
    %18 = arith.mulf %17, %17 : vector<8x128xf32>
    %cst_4 = arith.constant dense<0.000000e+00> : vector<8xf32>
    %19 = vector.multi_reduction <add>, %18, %cst_4 [1] : vector<8x128xf32> to vector<8xf32>
    %20 = vector.shape_cast %19 : vector<8xf32> to vector<8x1xf32>
    %cst_5 = arith.constant 3.125000e-02 : f32
    %21 = vector.broadcast %cst_5 : f32 to vector<8x1xf32>
    %22 = arith.mulf %20, %21 : vector<8x1xf32>
    %cst_6 = arith.constant 9.99999974E-6 : f32
    %23 = vector.broadcast %cst_6 : f32 to vector<8x1xf32>
    %24 = arith.addf %22, %23 : vector<8x1xf32>
    %25 = math.rsqrt %24 : vector<8x1xf32>
    %26 = vector.broadcast %25 : vector<8x1xf32> to vector<8x128xf32>
    %27 = arith.mulf %17, %26 : vector<8x128xf32>
    %c0_7 = arith.constant 0 : index
    %c0_8 = arith.constant 0 : index
    %28 = vector.load %arg3[%c0_7, %c0_8] : memref<1x128xf32, #tpu.memory_space<vmem>>, vector<1x128xf32>
    %29 = vector.broadcast %28 : vector<1x128xf32> to vector<8x128xf32>
    %30 = arith.mulf %27, %29 : vector<8x128xf32>
    %c0_9 = arith.constant 0 : index
    %c0_10 = arith.constant 0 : index
    %31 = vector.load %arg4[%c0_9, %c0_10] : memref<1x128xf32, #tpu.memory_space<vmem>>, vector<1x128xf32>
    %32 = vector.broadcast %31 : vector<1x128xf32> to vector<8x128xf32>
    %33 = arith.addf %30, %32 : vector<8x128xf32>
    %c0_11 = arith.constant 0 : index
    %c0_12 = arith.constant 0 : index
    %34 = vector.load %arg5[%c0_11, %c0_12] : memref<128x128xf32, #tpu.memory_space<vmem>>, vector<128x128xf32>
    %cst_13 = arith.constant dense<0.000000e+00> : vector<8x128xf32>
    %35 = tpu.matmul %33, %34, %cst_13 {dimension_numbers = #tpu.dot_dimension_numbers<[1], [0], [0], [1], [0, 0, 1, 1], [], []>} : vector<8x128xf32>, vector<128x128xf32>, vector<8x128xf32> -> vector<8x128xf32>
    %c0_14 = arith.constant 0 : index
    %c0_15 = arith.constant 0 : index
    %36 = vector.load %arg6[%c0_14, %c0_15] : memref<1x128xf32, #tpu.memory_space<vmem>>, vector<1x128xf32>
    %37 = vector.broadcast %36 : vector<1x128xf32> to vector<8x128xf32>
    %38 = arith.addf %35, %37 : vector<8x128xf32>
    %c0_16 = arith.constant 0 : index
    %c0_17 = arith.constant 0 : index
    %39 = vector.load %arg7[%c0_16, %c0_17] : memref<8x128xf32, #tpu.memory_space<vmem>>, vector<8x128xf32>
    tpu.vector_store %arg7[%c0_16, %c0_17], %38 {strides = array<i32>} : memref<8x128xf32, #tpu.memory_space<vmem>>, vector<8x128xf32>,
    return
  }
  func.func @transform_0(%arg0: i32, %arg1: i32) -> (i32, i32) {
    %c0_i32 = arith.constant 0 : i32
    %c0_i32_0 = arith.constant 0 : i32
    return %arg0, %c0_i32 : i32, i32
  }
  func.func @transform_1(%arg0: i32, %arg1: i32) -> (i32, i32) {
    %c0_i32 = arith.constant 0 : i32
    %c0_i32_0 = arith.constant 0 : i32
    %c0_i32_1 = arith.constant 0 : i32
    return %c0_i32, %c0_i32_0 : i32, i32
  }
  func.func @transform_2(%arg0: i32, %arg1: i32) -> (i32, i32) {
    %c0_i32 = arith.constant 0 : i32
    %c0_i32_0 = arith.constant 0 : i32
    %c0_i32_1 = arith.constant 0 : i32
    return %c0_i32, %c0_i32_0 : i32, i32
  }
  func.func @transform_3(%arg0: i32, %arg1: i32) -> (i32, i32) {
    %c0_i32 = arith.constant 0 : i32
    %c0_i32_0 = arith.constant 0 : i32
    return %c0_i32, %arg1 : i32, i32
  }
  func.func @transform_4(%arg0: i32, %arg1: i32) -> (i32, i32) {
    %c0_i32 = arith.constant 0 : i32
    %c0_i32_0 = arith.constant 0 : i32
    return %c0_i32, %arg1 : i32, i32
  }
  func.func @transform_5(%arg0: i32, %arg1: i32) -> (i32, i32) {
    %c0_i32 = arith.constant 0 : i32
    return %arg0, %arg1 : i32, i32
  }
}

</mosaic_0001>

<bundles_post_ra>
// kernel: tpu_custom_call.1
= control target key start
LH: loop header
LB: loop body
LE: loop exit
PB: predicated region body
PF: predicated region fallthrough
CT: control target
= control target key end

     0   :  { %10 = vsyncpa [#allocation3], 0  ;;  %s1125_s0 = inlined_call_operand.hbm [shape: f32[16,128], index: 0, kind: input, shape index: {}]   ;;  %s1126_s1 = inlined_call_operand.vmem [shape: f32[1,128], index: 1, kind: input, shape index: {}]   ;;  %s1127_s2 = inlined_call_operand.vmem [shape: f32[1,128], index: 2, kind: input, shape index: {}]   ;;  %s1128_s3 = inlined_call_operand.hbm [shape: f32[128,128], index: 3, kind: input, shape index: {}]   ;;  %s1129_s4 = inlined_call_operand.vmem [shape: f32[1,128], index: 4, kind: input, shape index: {}]   ;;  %s1130_s5 = inlined_call_operand.hbm [shape: f32[16,128], index: 5, kind: output, shape index: {}]  }
   0x1   :  { %12 = vsyncpa [#allocation3 + $0x1], 0 }
   0x2   :  { %13 = vsyncpa [#allocation6], 0 }
   0x3   :  { %14 = vsyncpa [#allocation4], 0 }
   0x4   :  { %16 = vsyncpa [#allocation4 + $0x1], 0  ;;  %s896_s18 = smov 0   ;;  %s898_s19 = smov 0  }
   0x5   :  { %s900_s20 = smov 0   ;;  %s902_s21 = smov 0  }
   0x6   :  { %s904_s22 = smov 0   ;;  %s906_s23 = smov 0  }
   0x7 LB: > { %s537_s24 = sadd.s32 4294967295, %s856_s23   ;;  %s538_s25 = sadd.s32 4294967294, %s856_s23   ;;  %s856_s23 = sphi %s906_s23, %s22_s23   ;;  %s852_s22 = sphi %s904_s22, %s1154_s22   ;;  %s848_s21 = sphi %s902_s21, %s1153_s21   ;;  %s844_s20 = sphi %s900_s20, %s1152_s20   ;;  %s840_s19 = sphi %s898_s19, %s1151_s19   ;;  %s836_s18 = sphi %s896_s18, %s1150_s18  }
   0x8   : > { %p54_p0 = scmp.ne.s32.totalorder %s840_s19, %s836_s18  ;;  %p930_p1 = scmp.eq.s32.totalorder %s537_s24, 0 }
   0x9   : > { %p934_p2 = scmp.eq.s32.totalorder %s537_s24, 1  ;;  %p180_p3 = scmp.eq.s32.totalorder %s538_s25, 1 }
   0xa   : > { %s1135_s26 = scalar_select %p930_p1, 1, 0 }
   0xb   : > { %s1136_s27 = scalar_select %p934_p2, 1, 0 }
   0xc   : > { %p940_p4 = por %p930_p1, %p54_p0  ;;  %p539_p5 = scmp.ge.s32.totalorder %s856_s23, 1 }
   0xd   : > { %p945_p6 = por %p180_p3, %p54_p0  ;;  %p187_p7 = scmp.lt.s32.totalorder %s856_s23, 3 }
   0xe   : > { %s1137_s28 = scalar_select %p940_p4, 1, 0 }
   0xf   : > { %s1138_s29 = scalar_select %p945_p6, 1, 0 }
  0x10   : > { %p950_p8 = pnand %p539_p5, %p187_p7  ;;  %s858_s6 = smov [#allocation5]  }
  0x11   : > { %s207_s7 = sshll.u32 %s858_s6, 4  ;;  %s34_s9 = sadd.s32 1, %s852_s22  ;;  %s208_s7 = int_to_ptr.vmem [resolvable:$true] %s207_s7 }
  0x12   : > { %s1139_s30 = scalar_select %p950_p8, 1, 0 }
  0x13   : > { %p640_p9 = pneg %p950_p8  ;;  %s712_s12 = scalar_lea.hbm %s1128_s3, 2048 }
  0x14   : > { %p713_p12 = scmp.ne.s32.totalorder %s1128_s3, %s712_s12  ;;  %p719_p5 = scmp.lt.u32.totalorder %s712_s12, %s1128_s3 }
  0x15   : > { %p959_p11 = pnand %p640_p9, %p930_p1 }
  0x17   : > { %p714_p13 = pneg %p959_p11 }
  0x19   : > { %p715_p0 = pnand %p714_p13, %p713_p12 }
  0x1b   : > { %p716_p3 = pneg %p715_p0 }
  0x1d   : > { %p721_p7 = pnand %p719_p5, %p716_p3 }
  0x1f   : > { %724 = shalt.err (!%p721_p7)
}
  0x20   : > { %s725_s17 = scalar_lea.vmem %s208_s7, 2048  ;;  %p733_p1 = scmp.lt.s32.totalorder %s208_s7, %s208_s7 }
  0x21   : > { %p726_p9 = scmp.ne.s32.totalorder %s208_s7, %s725_s17  ;;  %p734_p4 = scmp.lt.s32.totalorder %s725_s17, %s725_s17 }
  0x23   : > { %p728_p10 = pnand %p726_p9, %p714_p13  ;;  %p735_p8 = por %p734_p4, %p733_p1 }
  0x25   : > { %p729_p6 = pneg %p728_p10 }
  0x27   : > { %p736_p2 = pnand %p735_p8, %p729_p6 }
  0x29   : > { %739 = shalt.err (!%p736_p2)
}
  0x2a   : > { %s859_s24 = smov 128   ;;  %s860_s25 = smov 8  }
  0x2b   : > { %643 = dma.hbm_to_vmem [thread:$0]  (!%p959_p11), %s1128_s3, 2048, %s208_s7, [#allocation6], %s859_s24, %s859_s24, %s860_s25  }
  0x2c   : > { %p36_p1 = scmp.ge.s32.totalorder %s34_s9, 2  ;;  %s41_s11 = sadd.s32 1, %s844_s20 }
  0x2d   : > { %p48_p2 = scmp.ne.s32.totalorder %s844_s20, %s840_s19  ;;  %p49_p4 = scmp.eq.s32.totalorder %s856_s23, 0 }
  0x2e   : > { %s1156_s9 = smov (%p36_p1, %s34_s9), 0  ;;  %p1142_p8 = scmp.ne.s32.totalorder %s1136_s27, 0 }
  0x2f   : > { %p986_p6 = por %p49_p4, %p48_p2  ;;  %s38_s8 = ssub.s32 %s852_s22, %s1156_s9 }
  0x30   : > { %p992_p10 = por %p1142_p8, %p48_p2  ;;  %p653_p12 = scmp.lt.s32.totalorder %s856_s23, 2 }
  0x31   : > { %p39_p11 = scmp.eq.s32.totalorder %s38_s8, 0  ;;  %s227_s7 = sand.u32 1, %s844_s20  }
  0x32   : > { %s543_s14 = sshll.u32 %s227_s7, 3  ;;  %s544_s16 = sshll.u32 %s852_s22, 7 }
  0x33   : > { %s1001_s15 = scalar_select %p39_p11, %s844_s20, %s41_s11  }
  0x34   : > { %s1007_s25 = scalar_lea.hbm %s1125_s0, %s544_s16  ;;  %s231_s27 = scalar_lea.vmem [#allocation2], %s543_s14 }
  0x35   : > { %s238_s6 = sshll.u32 %s231_s27, 4  ;;  %p1013_p13 = pnand %p653_p12, %p986_p6  ;;  %s1009_s6 = int_to_ptr.vmem [resolvable:$true] %s238_s6 }
  0x36   : > { %s228_s11 = scalar_lea.sflag [#allocation3], %s227_s7  ;;  %s740_s8 = scalar_lea.hbm %s1007_s25, 128 }
  0x37   : > { %p741_p0 = scmp.ne.s32.totalorder %s1007_s25, %s740_s8  ;;  %p742_p3 = pneg %p1013_p13 }
  0x38   : > { %s745_s17 = scalar_lea.hbm %s1125_s0, 256  ;;  %p746_p9 = scmp.lt.u32.totalorder %s1007_s25, %s1125_s0 }
  0x39   : > { %p743_p5 = pnand %p742_p3, %p741_p0  ;;  %p747_p1 = scmp.lt.u32.totalorder %s745_s17, %s740_s8 }
  0x3a   : > { %p749_p4 = scmp.lt.u32.totalorder %s740_s8, %s1007_s25 }
  0x3b   : > { %p744_p7 = pneg %p743_p5  ;;  %p748_p2 = por %p747_p1, %p746_p9 }
  0x3d   : > { %p750_p6 = por %p749_p4, %p748_p2 }
  0x3f   : > { %p751_p8 = pnand %p750_p6, %p744_p7 }
  0x41   : > { %754 = shalt.err (!%p751_p8)
}
  0x42   : > { %s755_s7 = scalar_lea.vmem %s1009_s6, 128  ;;  %s861_s27 = smov [#allocation2]  }
  0x43   : > { %p756_p12 = scmp.ne.s32.totalorder %s1009_s6, %s755_s7  ;;  %s760_s14 = sshll.u32 %s861_s27, 4  ;;  %s761_s14 = int_to_ptr.vmem [resolvable:$false] %s760_s14 }
  0x44   : > { %s762_s16 = scalar_lea.vmem %s761_s14, 256  ;;  %p763_p5 = scmp.lt.s32.totalorder %s1009_s6, %s761_s14 }
  0x45   : > { %p758_p11 = pnand %p756_p12, %p742_p3  ;;  %p764_p9 = scmp.lt.s32.totalorder %s762_s16, %s755_s7 }
  0x47   : > { %p759_p0 = pneg %p758_p11  ;;  %p765_p1 = por %p764_p9, %p763_p5 }
  0x49   : > { %p766_p2 = pnand %p765_p1, %p759_p0 }
  0x4b   : > { %769 = shalt.err (!%p766_p2)
}
  0x4c   : > { %647 = dma.hbm_to_vmem [thread:$0]  (!%p1013_p13), %s1007_s25, 128, %s1009_s6, %s228_s11  }
  0x4d   : > { %p1145_p7 = scmp.ne.s32.totalorder %s1139_s30, 0 }
  0x4e   : > { %s1045_s8 = sand.u32 (!%p1145_p7), 1, %s840_s19   ;;  %p1146_p3 = scmp.ne.s32.totalorder (!%p1145_p7), %s1137_s28, 0 }
  0x4f   : > { %247 = sbr.rel (%p1145_p7) target bundleno = 636 (0x27c), region = 40  ;;  %s546_s17 = sshll.u32 (!%p1145_p7), %s1045_s8, 3 }
  0x50   : > { %s250_s12 = scalar_lea.sflag (!%p1145_p7), [#allocation3], %s1045_s8  ;;  %s253_s24 = scalar_lea.vmem (!%p1145_p7), [#allocation2], %s546_s17 }
  0x56   : > { %823 = dma.done.wait (%p1146_p3), %s250_s12, 128  }
  0x57   : > { %825 = vsyncadd (%p1146_p3), %s250_s12, 4294967168  ;;  %p1147_p13 = scmp.ne.s32.totalorder %s1135_s26, 0 }
  0x59   : > { %827 = dma.done.wait (%p1147_p13), [#allocation6], 2048  }
  0x5a   : > { %829 = vsyncadd (%p1147_p13), [#allocation6], 4294965248  ;;  %v291_v0 = vlaneseq  ;;  %v290_v2 = vld [vmem:[%s253_s24] sm:$0xff]  ;;  %v325_v4 = vld [vmem:[#allocation5] sm:$0xff]  ;;  %v862_v7 = vmov 0.0|0.0   ;;  %vm863_vm1 = vmmov 0  }
  0x5b   : > { %v326_v5 = vld [vmem:[#allocation5 + $0x8] sm:$0xff]  ;;  %v327_v6 = vld [vmem:[#allocation5 + $0x10] sm:$0xff]  ;;  %608 = vmatprep.subr.bf16.mxu0 %v862_v7  ;;  %v328_v9 = vld [vmem:[#allocation5 + $0x18] sm:$0xff]  ;;  %v864_v27 = vmov 0.0   ;;  %s553_s11 = sshll.u32 %s848_s21, 7  ;;  %s286_s7 = scalar_lea.vmem [#allocation7], %s546_s17 }
  0x5c   : > { %v292_v1 = vand.u32 127, %v291_v0  ;;  %v609_v8 = vpack.c.bf16 %v326_v5, %v325_v4  ;;  %v612_v10 = vpack.c.bf16 %v328_v9, %v327_v6  ;;  %v329_v11 = vld [vmem:[#allocation5 + $0x20] sm:$0xff]  ;;  %v330_v12 = vld [vmem:[#allocation5 + $0x28] sm:$0xff]  ;;  %v331_v19 = vld [vmem:[#allocation5 + $0x30] sm:$0xff]  ;;  %605 = vmatprep.mubr.msk.f32.mxu0 %vm863_vm1, %v864_v27  ;;  %s434_s27 = sshll.u32 %s286_s7, 4  ;;  %s1076_s12 = scalar_lea.hbm %s1130_s5, %s553_s11  ;;  %s1078_s27 = int_to_ptr.vmem [resolvable:$true] %s434_s27 }
  0x5d   : > { %v615_v13 = vpack.c.bf16 %v330_v12, %v329_v11  ;;  %v332_v20 = vld [vmem:[#allocation5 + $0x38] sm:$0xff]  ;;  %v333_v22 = vld [vmem:[#allocation5 + $0x40] sm:$0xff]  ;;  %v334_v23 = vld [vmem:[#allocation5 + $0x48] sm:$0xff]  ;;  %s420_s24 = scalar_lea.sflag [#allocation4], %s1045_s8  ;;  %s770_s26 = scalar_lea.vmem %s1078_s27, 128 }
  0x5e   : > { %vm293_vm0 = vcmp.lt.s32.totalorder %v292_v1, 32  ;;  %610 = vmatpush3.bf16.msra.mxu0 %v609_v8  ;;  %v618_v21 = vpack.c.bf16 %v332_v20, %v331_v19  ;;  %v621_v24 = vpack.c.bf16 %v334_v23, %v333_v22  ;;  %v335_v25 = vld [vmem:[#allocation5 + $0x50] sm:$0xff]  ;;  %v336_v26 = vld [vmem:[#allocation5 + $0x58] sm:$0xff]  ;;  %v337_v29 = vld [vmem:[#allocation5 + $0x60] sm:$0xff]  ;;  %p771_p4 = scmp.ne.s32.totalorder %s1078_s27, %s770_s26  ;;  %s865_s21 = smov [#allocation7]  }
  0x5f   : > { %v296_v3 = vsel %vm293_vm0, %v290_v2, 0.0  ;;  %611 = vmatprep.subr.bf16.mxu0 %v862_v7  ;;  %v624_v28 = vpack.c.bf16 %v336_v26, %v335_v25  ;;  %v338_v30 = vld [vmem:[#allocation5 + $0x68] sm:$0xff]  ;;  %v339_v32 = vld [vmem:[#allocation5 + $0x70] sm:$0xff]  ;;  %v340_v33 = vld [vmem:[#allocation5 + $0x78] sm:$0xff]  ;;  %s774_s17 = sshll.u32 %s865_s21, 4  ;;  %s775_s17 = int_to_ptr.vmem [resolvable:$false] %s774_s17 }
  0x60   : > { %297 = vadd.xlane.f32.xlu0 %v296_v3  ;;  %v627_v31 = vpack.c.bf16 %v338_v30, %v337_v29  ;;  %v630_v34 = vpack.c.bf16 %v340_v33, %v339_v32  ;;  %v549_v39 = vld [vmem:[%s1126_s1] ss:$0 sm:$0xff]  ;;  %p772_p6 = pnand %p771_p4, %p992_p10  ;;  %s776_s28 = scalar_lea.vmem %s775_s17, 256 }
  0x61   : > { %v550_v41 = vld [vmem:[%s1127_s2] ss:$0 sm:$0xff]  ;;  %p777_p12 = scmp.lt.s32.totalorder %s1078_s27, %s775_s17  ;;  %p778_p11 = scmp.lt.s32.totalorder %s776_s28, %s770_s26 }
  0x62   : > { %613 = vmatpush3.bf16.msra.mxu0 %v612_v10  ;;  %v551_v44 = vld [vmem:[%s1129_s4] ss:$0 sm:$0xff]  ;;  %p773_p8 = pneg %p772_p6 }
  0x63   : > { %614 = vmatprep.subr.bf16.mxu0 %v862_v7  ;;  %p779_p0 = por %p778_p11, %p777_p12 }
  0x65   : > { %p780_p5 = pnand %p779_p0, %p773_p8 }
  0x66   : > { %616 = vmatpush3.bf16.msra.mxu0 %v615_v13 }
  0x67   : > { %617 = vmatprep.subr.bf16.mxu0 %v862_v7 }
  0x6a   : > { %619 = vmatpush3.bf16.msra.mxu0 %v618_v21 }
  0x6b   : > { %620 = vmatprep.subr.bf16.mxu0 %v862_v7 }
  0x6e   : > { %622 = vmatpush3.bf16.msra.mxu0 %v621_v24 }
  0x6f   : > { %623 = vmatprep.subr.bf16.mxu0 %v862_v7 }
  0x72   : > { %625 = vmatpush3.bf16.msra.mxu0 %v624_v28 }
  0x73   : > { %626 = vmatprep.subr.bf16.mxu0 %v862_v7 }
  0x76   : > { %628 = vmatpush3.bf16.msra.mxu0 %v627_v31 }
  0x77   : > { %629 = vmatprep.subr.bf16.mxu0 %v862_v7 }
  0x7a   : > { %631 = vmatpush3.bf16.msra.mxu0 %v630_v34 }
  0xed   : > { %v298_v14 = vpop.xlane.xlu0 %297 }
  0xee   : > { %v299_v15 = vmul.f32 0.03125, %v298_v14 }
  0xf0   : > { %v300_v16 = vsub.f32 %v296_v3, %v299_v15 }
  0xf2   : > { %v301_v17 = vsel %vm293_vm0, %v300_v16, 0.0 }
  0xf3   : > { %v302_v18 = vmul.f32 %v301_v17, %v301_v17 }
  0xf5   : > { %303 = vadd.xlane.f32.xlu0 %v302_v18 }
 0x182   : > { %v304_v35 = vpop.xlane.xlu0 %303 }
 0x183   : > { %v305_v36 = vmul.f32 0.03125, %v304_v35 }
 0x185   : > { %v306_v37 = vadd.f32 1e-05, %v305_v36 }
 0x187   : > { %710 = vrsqrt.f32 %v306_v37 }
 0x191   : > { %v711_v38 = vpop.eup %710 }
 0x192   : > { %v308_v40 = vmul.f32 %v711_v38, %v301_v17 }
 0x194   : > { %v316_v42 = vmul.f32 %v549_v39, %v308_v40 }
 0x196   : > { %v324_v43 = vadd.f32 %v550_v41, %v316_v42 }
 0x198   : > { %606 = vmatmul.mubr.f32.vlgmr.msra.gmra.mrb[0].mxu0 %v324_v43 }
 0x26b   : > { %v414_v45 = vpop.f32.mrb[0].mxu0 }
 0x26c   : > { %v415_v46 = vadd.f32 %v551_v44, %v414_v45  ;;  %v607_v47 = vpop.f32.mrb[1].mxu0 }
 0x26e   : > { %418 = vst [vmem:[%s286_s7] sm:$0xff] %v415_v46 }
 0x26f   : > { %783 = shalt.err (!%p780_p5)
}
 0x270   : > { %s784_s8 = scalar_lea.hbm %s1076_s12, 128  ;;  %s788_s6 = scalar_lea.hbm %s1130_s5, 256 }
 0x271   : > { %p785_p9 = scmp.ne.s32.totalorder %s1076_s12, %s784_s8  ;;  %p789_p7 = scmp.lt.u32.totalorder %s1076_s12, %s1130_s5 }
 0x272   : > { %p790_p3 = scmp.lt.u32.totalorder %s788_s6, %s784_s8  ;;  %p792_p4 = scmp.lt.u32.totalorder %s784_s8, %s1076_s12 }
 0x273   : > { %p786_p1 = pnand %p785_p9, %p992_p10 }
 0x274   : > { %p791_p13 = por %p790_p3, %p789_p7 }
 0x275   : > { %p787_p2 = pneg %p786_p1 }
 0x276   : > { %p793_p6 = por %p792_p4, %p791_p13 }
 0x278   : > { %p794_p8 = pnand %p793_p6, %p787_p2 }
 0x27a   : > { %797 = shalt.err (!%p794_p8)
}
 0x27b   : > { %638 = dma.vmem_to_hbm [thread:$0]  (%p992_p10), %s1078_s27, 128, %s1076_s12, %s420_s24  }
 0x27c PF: > { %s446_s7 = sand.u32 1, %s836_s18   ;;  %p1148_p12 = scmp.ne.s32.totalorder %s1138_s29, 0 }
 0x27d   : > { %p1149_p11 = scmp.ge.s32.totalorder %s856_s23, 2  ;;  %s447_s14 = scalar_lea.sflag [#allocation4], %s446_s7 }
 0x27f   : > { %p649_p0 = pnand %p1149_p11, %p1148_p12 }
 0x281   : > { %831 = dma.done.wait (!%p649_p0), %s447_s14, 128  }
 0x282   : > { %833 = vsyncadd (!%p649_p0), %s447_s14, 4294967168  ;;  %s22_s23 = sadd.s32 1, %s856_s23   ;;  %s1150_s18 = smov %s840_s19 }
 0x283   : > { %p19_p5 = scmp.ge.s32.totalorder %s22_s23, 4   ;;  %s1151_s19 = smov %s844_s20 }
 0x284   : > { %s1152_s20 = smov %s1001_s15  ;;  %s1153_s21 = smov %s852_s22 }
 0x285   : > { %s1154_s22 = smov %s1156_s9  ;;  %21 = sbr.rel (!%p19_p5) target bundleno = 7 (0x7), region = 93 }
 0x28c   :  { %452 = vsyncpa [#allocation3], 1 }
 0x28d   :  { %454 = vsyncpa [#allocation3 + $0x1], 1 }
 0x28e   :  { %455 = vsyncpa [#allocation6], 1 }
 0x28f   :  { %456 = vsyncpa [#allocation4], 1 }
 0x290   :  { %458 = vsyncpa [#allocation4 + $0x1], 1 }

</bundles_post_ra>
